<compile_context>
chip_gen: v5e
topology: v5e:2x2
jax: 0.10.0
libtpu: 0.0.40
codegen_flags: <defaults>
</compile_context>

<pallas_src>
import functools

import jax
import jax.numpy as jnp
from jax import lax
from jax.experimental import pallas as pl
from jax.experimental.pallas import tpu as pltpu

_VMEM_LIMIT = 32 * 1024 * 1024  # explicit scoped-VMEM limit (safe on v5e/v6e/v7x)


def _round_up(x, m):
    return ((x + m - 1) // m) * m


# ---------------------------------------------------------------------------
# Pallas kernels
# ---------------------------------------------------------------------------
def _conv_accumulate(xs_ref, w_ref, b_ref, yj_ref, *, ho, wo):
    """4x4 / stride-2 conv for one image from a single space-to-depth slab.

    xs_ref : (1, R2, 4*Cin) bf16  padded image, 2x2 space-to-depth, spatial grid
             (ho+1, wo+1) flattened row-major (plus zero pad rows).
    w_ref  : (4, 4*Cin, Op) bf16  one weight matrix per phase p = qh*2 + qw.
    Phase (qh, qw) LHS is the contiguous row window starting at qh*(wo+1)+qw;
    its row t = ho_*(wo+1)+wo_ is conv output (ho_, wo_); rows with
    t % (wo+1) == wo are junk (dropped later).  Accumulation is f32 on the MXU;
    the biased result is staged in the VMEM scratch yj_ref.
    """
    racc = ho * (wo + 1)
    wo1 = wo + 1
    acc = jnp.dot(xs_ref[0, 0:racc, :], w_ref[0],
                  preferred_element_type=jnp.float32)
    acc = acc + jnp.dot(xs_ref[0, 1:1 + racc, :], w_ref[1],
                        preferred_element_type=jnp.float32)
    acc = acc + jnp.dot(xs_ref[0, wo1:wo1 + racc, :], w_ref[2],
                        preferred_element_type=jnp.float32)
    acc = acc + jnp.dot(xs_ref[0, wo1 + 1:wo1 + 1 + racc, :], w_ref[3],
                        preferred_element_type=jnp.float32)
    yj_ref[...] = acc + b_ref[...]


def _gather_valid(yj_ref, ho, wo):
    """Drop the junk row (t % (wo+1) == wo) of each (wo+1)-row group -> (ho*wo, Op) f32."""
    wo1 = wo + 1
    return jnp.concatenate(
        [yj_ref[i * wo1:i * wo1 + wo, :] for i in range(ho)], axis=0)


def _conv_stats_kernel(xs_ref, w_ref, b_ref, y_ref, st_ref, yj_ref, *, ho, wo):
    """bn=True: conv + bias, per-image BN partial stats in f32, bf16 row-major output."""
    _conv_accumulate(xs_ref, w_ref, b_ref, yj_ref, ho=ho, wo=wo)
    y = _gather_valid(yj_ref, ho, wo)                       # (mi, Op) f32
    st_ref[0] = jnp.concatenate(
        [jnp.sum(y, axis=0, keepdims=True),
         jnp.sum(y * y, axis=0, keepdims=True)], axis=0)    # (2, Op) f32
    y_ref[0] = y.astype(y_ref.dtype)                        # bf16 intermediate


def _conv_lrelu_kernel(xs_ref, w_ref, b_ref, y_ref, yj_ref, *, ho, wo, slope):
    """bn=False: conv + bias + LeakyReLU, channel-major f32 output (final tensor)."""
    _conv_accumulate(xs_ref, w_ref, b_ref, yj_ref, ho=ho, wo=wo)
    y = _gather_valid(yj_ref, ho, wo)                       # (mi, Op) f32
    y = jnp.where(y > 0, y, slope * y)
    y_ref[0] = jnp.transpose(y).astype(y_ref.dtype)         # (Op, mi) -> NCHW


def _bn_lrelu_kernel(y_ref, sc_ref, sh_ref, o_ref, *, slope):
    """BN normalize (folded into a per-channel affine) + LeakyReLU, channel-major out."""
    z = y_ref[0].astype(jnp.float32) * sc_ref[...] + sh_ref[...]
    z = jnp.where(z > 0, z, slope * z)
    o_ref[0] = jnp.transpose(z)                              # (Op, tm)


# ---------------------------------------------------------------------------
# Layout prep (plain JAX, bf16) and tile selection
# ---------------------------------------------------------------------------
def _pack_slab(x_nchw, ho, wo):
    """NCHW -> single bf16 space-to-depth slab (n, R2, 4*Cin), one XLA transpose."""
    n, c, _, _ = x_nchw.shape
    xb = x_nchw.astype(jnp.bfloat16)                         # cast BEFORE layout prep
    xp = jnp.pad(xb, ((0, 0), (0, 0), (1, 1), (1, 1)))
    xs = xp.reshape(n, c, ho + 1, 2, wo + 1, 2)
    xs = jnp.transpose(xs, (0, 2, 4, 3, 5, 1))               # (n, i, j, rh, rw, c)
    xs = xs.reshape(n, (ho + 1) * (wo + 1), 4 * c)
    r2 = _round_up((ho + 1) * (wo + 1) + 1, 8)               # +1: last phase window
    return jnp.pad(xs, ((0, 0), (0, r2 - (ho + 1) * (wo + 1)), (0, 0)))


def _pack_weights(w_oihw, bias, op):
    o, c, kh, kw = w_oihw.shape
    assert kh == 4 and kw == 4
    wt = jnp.transpose(w_oihw.astype(jnp.float32), (2, 3, 1, 0))   # (kh,kw,c,o)
    wt = wt.reshape(2, 2, 2, 2, c, o)                              # (qh,rh,qw,rw,c,o)
    wt = jnp.transpose(wt, (0, 2, 1, 3, 4, 5))                     # (qh,qw,rh,rw,c,o)
    ws = wt.reshape(4, 4 * c, o)
    ws = jnp.pad(ws, ((0, 0), (0, 0), (0, op - o))).astype(jnp.bfloat16)
    bp = jnp.pad(bias.astype(jnp.float32), (0, op - o)).reshape(1, op)
    return ws, bp


def _pick_tile(mi, op, budget_bytes=8 * 1024 * 1024):
    """Largest spatial tile dividing mi that fits a per-stream VMEM byte budget and is
    either a multiple of 128 (lane-dense channel-major stores) or mi itself."""
    per_row = (2 * 2 + 2 * 4) * op            # double-buffered bf16 in + f32 out
    cap = max(128, budget_bytes // per_row)
    if mi <= cap:
        return mi
    t = (min(cap, mi) // 128) * 128
    while t >= 128:
        if mi % t == 0:
            return t
        t -= 128
    return mi


# ---------------------------------------------------------------------------
# DiscriminatorBlock forward
# ---------------------------------------------------------------------------
def discriminator_block_forward(x_nchw, params, *, bn=True, eps=1e-5, slope=0.2):
    n, c, h, w = x_nchw.shape
    o = params["w"].shape[0]
    assert h % 2 == 0 and w % 2 == 0, "k=4,s=2,p=1 path assumes even H, W"
    ho, wo = h // 2, w // 2
    mi = ho * wo
    assert mi % 8 == 0, "output spatial size (H/2)*(W/2) must be a multiple of 8"
    op = _round_up(o, 128)                                   # lane-dense channels
    k4 = 4 * c

    xs = _pack_slab(x_nchw, ho, wo)                          # (n, R2, 4c) bf16
    r2 = xs.shape[1]
    ws, bp = _pack_weights(params["w"], params["b"], op)     # (4,4c,Op) bf16, (1,Op) f32

    conv_in_specs = [
        pl.BlockSpec((1, r2, k4), lambda i: (i, 0, 0)),
        pl.BlockSpec((4, k4, op), lambda i: (0, 0, 0)),
        pl.BlockSpec((1, op), lambda i: (0, 0)),
    ]
    conv_cp = pltpu.CompilerParams(dimension_semantics=("parallel",),
                                   vmem_limit_bytes=_VMEM_LIMIT)
    conv_scratch = [pltpu.VMEM((ho * (wo + 1), op), jnp.float32)]

    if bn:
        y, stats = pl.pallas_call(
            functools.partial(_conv_stats_kernel, ho=ho, wo=wo),
            out_shape=(jax.ShapeDtypeStruct((n, mi, op), jnp.bfloat16),
                       jax.ShapeDtypeStruct((n, 2, op), jnp.float32)),
            grid_spec=pltpu.PrefetchScalarGridSpec(
                num_scalar_prefetch=0, grid=(n,),
                in_specs=conv_in_specs,
                out_specs=[pl.BlockSpec((1, mi, op), lambda i: (i, 0, 0)),
                           pl.BlockSpec((1, 2, op), lambda i: (i, 0, 0))],
                scratch_shapes=conv_scratch),
            compiler_params=conv_cp,
        )(xs, ws, bp)

        # Tiny O(C) reduction of per-image partials -> training-mode BN affine.
        cnt = float(n * mi)
        tot = jnp.sum(stats, axis=0)                         # (2, Op) f32
        mean = tot[0] / cnt
        var = jnp.maximum(tot[1] / cnt - mean * mean, 0.0)   # guard cancellation
        inv = lax.rsqrt(var + eps)
        # Padded channels: weights/bias/beta pads are 0 and gamma pad is 1.0, so the
        # padded lanes stay exactly 0 through the affine (documented invariant).
        gamma = jnp.pad(params["gamma"].astype(jnp.float32), (0, op - o),
                        constant_values=1.0)
        beta = jnp.pad(params["beta"].astype(jnp.float32), (0, op - o))
        scale = (gamma * inv).reshape(1, op)
        shift = (beta - mean * gamma * inv).reshape(1, op)

        tm = _pick_tile(mi, op)
        out = pl.pallas_call(
            functools.partial(_bn_lrelu_kernel, slope=slope),
            out_shape=jax.ShapeDtypeStruct((n, op, mi), jnp.float32),
            grid_spec=pltpu.PrefetchScalarGridSpec(
                num_scalar_prefetch=0, grid=(n, mi // tm),
                in_specs=[pl.BlockSpec((1, tm, op), lambda b, s: (b, s, 0)),
                          pl.BlockSpec((1, op), lambda b, s: (0, 0)),
                          pl.BlockSpec((1, op), lambda b, s: (0, 0))],
                out_specs=pl.BlockSpec((1, op, tm), lambda b, s: (b, 0, s))),
            compiler_params=pltpu.CompilerParams(
                dimension_semantics=("parallel", "parallel"),
                vmem_limit_bytes=_VMEM_LIMIT),
        )(y, scale, shift)
    else:
        out = pl.pallas_call(
            functools.partial(_conv_lrelu_kernel, ho=ho, wo=wo, slope=slope),
            out_shape=jax.ShapeDtypeStruct((n, op, mi), jnp.float32),
            grid_spec=pltpu.PrefetchScalarGridSpec(
                num_scalar_prefetch=0, grid=(n,),
                in_specs=conv_in_specs,
                out_specs=pl.BlockSpec((1, op, mi), lambda i: (i, 0, 0)),
                scratch_shapes=conv_scratch),
            compiler_params=conv_cp,
        )(xs, ws, bp)

    out = out.reshape(n, op, ho, wo)                         # already channel-major
    if op != o:
        out = out[:, :o]
    return out


# ---------------------------------------------------------------------------
# pure-JAX reference (bf16 conv inputs, f32 accumulation, training-mode BN)
# ---------------------------------------------------------------------------
def reference_block(x_nchw, params, *, bn=True, eps=1e-5, slope=0.2):
    y = lax.conv_general_dilated(
        x_nchw.astype(jnp.bfloat16), params["w"].astype(jnp.bfloat16),
        window_strides=(2, 2), padding=[(1, 1), (1, 1)],
        dimension_numbers=("NCHW", "OIHW", "NCHW"),
        preferred_element_type=jnp.float32)
    y = y + params["b"].astype(jnp.float32).reshape(1, -1, 1, 1)
    if bn:
        mean = jnp.mean(y, axis=(0, 2, 3), keepdims=True)
        var = jnp.var(y, axis=(0, 2, 3), keepdims=True)
        y = (y - mean) * lax.rsqrt(var + eps)
        y = y * params["gamma"].reshape(1, -1, 1, 1) + params["beta"].reshape(1, -1, 1, 1)
    return jnp.where(y > 0, y, slope * y)


if __name__ == "__main__":
    key = jax.random.PRNGKey(0)
    kx, kw, kb, kg, kbe = jax.random.split(key, 5)

    # Small shapes consistent with the module: batch=2, in_filters=4, 16x16 input,
    # out_filters=128 (lane-dense output channels).
    n, c_in, c_out, h, w = 2, 4, 128, 16, 16
    x = jax.random.normal(kx, (n, c_in, h, w), jnp.float32)
    params = {
        "w": 0.05 * jax.random.normal(kw, (c_out, c_in, 4, 4), jnp.float32),
        "b": 0.01 * jax.random.normal(kb, (c_out,), jnp.float32),
        "gamma": 1.0 + 0.1 * jax.random.normal(kg, (c_out,), jnp.float32),
        "beta": 0.1 * jax.random.normal(kbe, (c_out,), jnp.float32),
    }

    # bn=True block (module default); bf16 intermediate -> compare with loose tolerance.
    out = jax.block_until_ready(discriminator_block_forward(x, params, bn=True))
    assert out.shape == (n, c_out, h // 2, w // 2), out.shape
    assert bool(jnp.all(jnp.isfinite(out)))
    ref = jax.block_until_ready(reference_block(x, params, bn=True))
    assert bool(jnp.allclose(out, ref, atol=1e-2, rtol=1e-2)), \
        float(jnp.max(jnp.abs(out - ref)))

    # bn=False block (LeakyReLU fused into the conv kernel, f32 final output).
    out2 = jax.block_until_ready(discriminator_block_forward(x, params, bn=False))
    assert out2.shape == (n, c_out, h // 2, w // 2), out2.shape
    ref2 = jax.block_until_ready(reference_block(x, params, bn=False))
    assert bool(jnp.allclose(out2, ref2, atol=1e-2, rtol=1e-2)), \
        float(jnp.max(jnp.abs(out2 - ref2)))

    print("KERNEL_OK")
</pallas_src>

<mosaic_0001>
module attributes {stable_mosaic.version = 11 : i64} {
  func.func @_conv_stats_kernel(%arg0: i32, %arg1: memref<1x88x16xbf16, #tpu.memory_space<vmem>>, %arg2: memref<4x16x128xbf16, #tpu.memory_space<vmem>>, %arg3: memref<1x128xf32, #tpu.memory_space<vmem>>, %arg4: memref<1x64x128xbf16, #tpu.memory_space<vmem>>, %arg5: memref<1x2x128xf32, #tpu.memory_space<vmem>>, %arg6: memref<72x128xf32, #tpu.memory_space<vmem>>) attributes {dimension_semantics = [#tpu.dimension_semantics<parallel>], iteration_bounds = array<i64: 2>, scalar_prefetch = 0 : i64, scratch_operands = 1 : i64, tpu.core_type = #tpu.core_type<tc>, window_params = [{transform_indices = @transform_0, window_bounds = array<i64: 1, 88, 16>}, {pipeline_mode = #tpu.pipeline_mode<synchronous>, transform_indices = @transform_1, window_bounds = array<i64: 4, 16, 128>}, {pipeline_mode = #tpu.pipeline_mode<synchronous>, transform_indices = @transform_2, window_bounds = array<i64: 1, 128>}, {transform_indices = @transform_3, window_bounds = array<i64: 1, 64, 128>}, {transform_indices = @transform_4, window_bounds = array<i64: 1, 2, 128>}]} {
    %c0 = arith.constant 0 : index
    %c0_0 = arith.constant 0 : index
    %c0_1 = arith.constant 0 : index
    %0 = vector.load %arg1[%c0, %c0_0, %c0_1] : memref<1x88x16xbf16, #tpu.memory_space<vmem>>, vector<1x72x16xbf16>
    %1 = vector.shape_cast %0 : vector<1x72x16xbf16> to vector<72x16xbf16>
    %c0_2 = arith.constant 0 : index
    %c0_3 = arith.constant 0 : index
    %c0_4 = arith.constant 0 : index
    %2 = vector.load %arg2[%c0_2, %c0_3, %c0_4] : memref<4x16x128xbf16, #tpu.memory_space<vmem>>, vector<1x16x128xbf16>
    %3 = vector.shape_cast %2 : vector<1x16x128xbf16> to vector<16x128xbf16>
    %cst = arith.constant dense<0.000000e+00> : vector<72x128xf32>
    %4 = tpu.matmul %1, %3, %cst {dimension_numbers = #tpu.dot_dimension_numbers<[1], [0], [0], [1], [0, 0, 1, 1], [], []>} : vector<72x16xbf16>, vector<16x128xbf16>, vector<72x128xf32> -> vector<72x128xf32>
    %c0_5 = arith.constant 0 : index
    %c1 = arith.constant 1 : index
    %c0_6 = arith.constant 0 : index
    %5 = vector.load %arg1[%c0_5, %c1, %c0_6] : memref<1x88x16xbf16, #tpu.memory_space<vmem>>, vector<1x72x16xbf16>
    %6 = vector.shape_cast %5 : vector<1x72x16xbf16> to vector<72x16xbf16>
    %c1_7 = arith.constant 1 : index
    %c0_8 = arith.constant 0 : index
    %c0_9 = arith.constant 0 : index
    %7 = vector.load %arg2[%c1_7, %c0_8, %c0_9] : memref<4x16x128xbf16, #tpu.memory_space<vmem>>, vector<1x16x128xbf16>
    %8 = vector.shape_cast %7 : vector<1x16x128xbf16> to vector<16x128xbf16>
    %cst_10 = arith.constant dense<0.000000e+00> : vector<72x128xf32>
    %9 = tpu.matmul %6, %8, %cst_10 {dimension_numbers = #tpu.dot_dimension_numbers<[1], [0], [0], [1], [0, 0, 1, 1], [], []>} : vector<72x16xbf16>, vector<16x128xbf16>, vector<72x128xf32> -> vector<72x128xf32>
    %10 = arith.addf %4, %9 : vector<72x128xf32>
    %c0_11 = arith.constant 0 : index
    %c9 = arith.constant 9 : index
    %c0_12 = arith.constant 0 : index
    %11 = vector.load %arg1[%c0_11, %c9, %c0_12] : memref<1x88x16xbf16, #tpu.memory_space<vmem>>, vector<1x72x16xbf16>
    %12 = vector.shape_cast %11 : vector<1x72x16xbf16> to vector<72x16xbf16>
    %c2 = arith.constant 2 : index
    %c0_13 = arith.constant 0 : index
    %c0_14 = arith.constant 0 : index
    %13 = vector.load %arg2[%c2, %c0_13, %c0_14] : memref<4x16x128xbf16, #tpu.memory_space<vmem>>, vector<1x16x128xbf16>
    %14 = vector.shape_cast %13 : vector<1x16x128xbf16> to vector<16x128xbf16>
    %cst_15 = arith.constant dense<0.000000e+00> : vector<72x128xf32>
    %15 = tpu.matmul %12, %14, %cst_15 {dimension_numbers = #tpu.dot_dimension_numbers<[1], [0], [0], [1], [0, 0, 1, 1], [], []>} : vector<72x16xbf16>, vector<16x128xbf16>, vector<72x128xf32> -> vector<72x128xf32>
    %16 = arith.addf %10, %15 : vector<72x128xf32>
    %c0_16 = arith.constant 0 : index
    %c10 = arith.constant 10 : index
    %c0_17 = arith.constant 0 : index
    %17 = vector.load %arg1[%c0_16, %c10, %c0_17] : memref<1x88x16xbf16, #tpu.memory_space<vmem>>, vector<1x72x16xbf16>
    %18 = vector.shape_cast %17 : vector<1x72x16xbf16> to vector<72x16xbf16>
    %c3 = arith.constant 3 : index
    %c0_18 = arith.constant 0 : index
    %c0_19 = arith.constant 0 : index
    %19 = vector.load %arg2[%c3, %c0_18, %c0_19] : memref<4x16x128xbf16, #tpu.memory_space<vmem>>, vector<1x16x128xbf16>
    %20 = vector.shape_cast %19 : vector<1x16x128xbf16> to vector<16x128xbf16>
    %cst_20 = arith.constant dense<0.000000e+00> : vector<72x128xf32>
    %21 = tpu.matmul %18, %20, %cst_20 {dimension_numbers = #tpu.dot_dimension_numbers<[1], [0], [0], [1], [0, 0, 1, 1], [], []>} : vector<72x16xbf16>, vector<16x128xbf16>, vector<72x128xf32> -> vector<72x128xf32>
    %22 = arith.addf %16, %21 : vector<72x128xf32>
    %c0_21 = arith.constant 0 : index
    %c0_22 = arith.constant 0 : index
    %23 = vector.load %arg3[%c0_21, %c0_22] : memref<1x128xf32, #tpu.memory_space<vmem>>, vector<1x128xf32>
    %24 = vector.broadcast %23 : vector<1x128xf32> to vector<72x128xf32>
    %25 = arith.addf %22, %24 : vector<72x128xf32>
    %c0_23 = arith.constant 0 : index
    %c0_24 = arith.constant 0 : index
    %26 = vector.load %arg6[%c0_23, %c0_24] : memref<72x128xf32, #tpu.memory_space<vmem>>, vector<72x128xf32>
    tpu.vector_store %arg6[%c0_23, %c0_24], %25 {strides = array<i32>} : memref<72x128xf32, #tpu.memory_space<vmem>>, vector<72x128xf32>,
    %c0_25 = arith.constant 0 : index
    %c0_26 = arith.constant 0 : index
    %27 = vector.load %arg6[%c0_25, %c0_26] : memref<72x128xf32, #tpu.memory_space<vmem>>, vector<8x128xf32>
    %c9_27 = arith.constant 9 : index
    %c0_28 = arith.constant 0 : index
    %28 = vector.load %arg6[%c9_27, %c0_28] : memref<72x128xf32, #tpu.memory_space<vmem>>, vector<8x128xf32>
    %c18 = arith.constant 18 : index
    %c0_29 = arith.constant 0 : index
    %29 = vector.load %arg6[%c18, %c0_29] : memref<72x128xf32, #tpu.memory_space<vmem>>, vector<8x128xf32>
    %c27 = arith.constant 27 : index
    %c0_30 = arith.constant 0 : index
    %30 = vector.load %arg6[%c27, %c0_30] : memref<72x128xf32, #tpu.memory_space<vmem>>, vector<8x128xf32>
    %c36 = arith.constant 36 : index
    %c0_31 = arith.constant 0 : index
    %31 = vector.load %arg6[%c36, %c0_31] : memref<72x128xf32, #tpu.memory_space<vmem>>, vector<8x128xf32>
    %c45 = arith.constant 45 : index
    %c0_32 = arith.constant 0 : index
    %32 = vector.load %arg6[%c45, %c0_32] : memref<72x128xf32, #tpu.memory_space<vmem>>, vector<8x128xf32>
    %c54 = arith.constant 54 : index
    %c0_33 = arith.constant 0 : index
    %33 = vector.load %arg6[%c54, %c0_33] : memref<72x128xf32, #tpu.memory_space<vmem>>, vector<8x128xf32>
    %c63 = arith.constant 63 : index
    %c0_34 = arith.constant 0 : index
    %34 = vector.load %arg6[%c63, %c0_34] : memref<72x128xf32, #tpu.memory_space<vmem>>, vector<8x128xf32>
    %35 = tpu.concatenate %27, %28, %29, %30, %31, %32, %33, %34 in 0 : vector<8x128xf32>, vector<8x128xf32>, vector<8x128xf32>, vector<8x128xf32>, vector<8x128xf32>, vector<8x128xf32>, vector<8x128xf32>, vector<8x128xf32> -> vector<64x128xf32>
    %cst_35 = arith.constant dense<0.000000e+00> : vector<128xf32>
    %36 = vector.multi_reduction <add>, %35, %cst_35 [0] : vector<64x128xf32> to vector<128xf32>
    %37 = vector.shape_cast %36 : vector<128xf32> to vector<1x128xf32>
    %38 = arith.mulf %35, %35 : vector<64x128xf32>
    %cst_36 = arith.constant dense<0.000000e+00> : vector<128xf32>
    %39 = vector.multi_reduction <add>, %38, %cst_36 [0] : vector<64x128xf32> to vector<128xf32>
    %40 = vector.shape_cast %39 : vector<128xf32> to vector<1x128xf32>
    %41 = tpu.concatenate %37, %40 in 0 : vector<1x128xf32>, vector<1x128xf32> -> vector<2x128xf32>
    %c0_37 = arith.constant 0 : index
    %c0_38 = arith.constant 0 : index
    %c0_39 = arith.constant 0 : index
    %42 = vector.load %arg5[%c0_37, %c0_38, %c0_39] : memref<1x2x128xf32, #tpu.memory_space<vmem>>, vector<1x2x128xf32>
    %43 = vector.shape_cast %42 : vector<1x2x128xf32> to vector<2x128xf32>
    %44 = vector.shape_cast %41 : vector<2x128xf32> to vector<1x2x128xf32>
    tpu.vector_store %arg5[%c0_37, %c0_38, %c0_39], %44 {strides = array<i32>} : memref<1x2x128xf32, #tpu.memory_space<vmem>>, vector<1x2x128xf32>,
    %45 = arith.truncf %35 : vector<64x128xf32> to vector<64x128xbf16>
    %c0_40 = arith.constant 0 : index
    %c0_41 = arith.constant 0 : index
    %c0_42 = arith.constant 0 : index
    %46 = vector.load %arg4[%c0_40, %c0_41, %c0_42] : memref<1x64x128xbf16, #tpu.memory_space<vmem>>, vector<1x64x128xbf16>
    %47 = vector.shape_cast %46 : vector<1x64x128xbf16> to vector<64x128xbf16>
    %48 = vector.shape_cast %45 : vector<64x128xbf16> to vector<1x64x128xbf16>
    tpu.vector_store %arg4[%c0_40, %c0_41, %c0_42], %48 {strides = array<i32>} : memref<1x64x128xbf16, #tpu.memory_space<vmem>>, vector<1x64x128xbf16>,
    return
  }
  func.func @transform_0(%arg0: i32) -> (i32, i32, i32) {
    %c0_i32 = arith.constant 0 : i32
    %c0_i32_0 = arith.constant 0 : i32
    %c0_i32_1 = arith.constant 0 : i32
    return %arg0, %c0_i32, %c0_i32_0 : i32, i32, i32
  }
  func.func @transform_1(%arg0: i32) -> (i32, i32, i32) {
    %c0_i32 = arith.constant 0 : i32
    %c0_i32_0 = arith.constant 0 : i32
    %c0_i32_1 = arith.constant 0 : i32
    %c0_i32_2 = arith.constant 0 : i32
    return %c0_i32, %c0_i32_0, %c0_i32_1 : i32, i32, i32
  }
  func.func @transform_2(%arg0: i32) -> (i32, i32) {
    %c0_i32 = arith.constant 0 : i32
    %c0_i32_0 = arith.constant 0 : i32
    %c0_i32_1 = arith.constant 0 : i32
    return %c0_i32, %c0_i32_0 : i32, i32
  }
  func.func @transform_3(%arg0: i32) -> (i32, i32, i32) {
    %c0_i32 = arith.constant 0 : i32
    %c0_i32_0 = arith.constant 0 : i32
    %c0_i32_1 = arith.constant 0 : i32
    return %arg0, %c0_i32, %c0_i32_0 : i32, i32, i32
  }
  func.func @transform_4(%arg0: i32) -> (i32, i32, i32) {
    %c0_i32 = arith.constant 0 : i32
    %c0_i32_0 = arith.constant 0 : i32
    %c0_i32_1 = arith.constant 0 : i32
    return %arg0, %c0_i32, %c0_i32_0 : i32, i32, i32
  }
}

</mosaic_0001>

<bundles_post_ra>
// kernel: tpu_custom_call.1
= control target key start
LH: loop header
LB: loop body
LE: loop exit
PB: predicated region body
PF: predicated region fallthrough
CT: control target
= control target key end

     0   :  { %10 = vsyncpa [#allocation4], 0  ;;  %s1317_s0 = inlined_call_operand.vmem [shape: bf16[2,88,16], index: 0, kind: input, shape index: {}]   ;;  %s1318_s1 = inlined_call_operand.vmem [shape: bf16[4,16,128], index: 1, kind: input, shape index: {}]   ;;  %s1319_s2 = inlined_call_operand.vmem [shape: f32[1,128], index: 2, kind: input, shape index: {}]   ;;  %s1320_s3 = inlined_call_operand.hbm [shape: bf16[2,64,128], index: 3, kind: output, shape index: {0}]   ;;  %s1321_s4 = inlined_call_operand.hbm [shape: f32[2,2,128], index: 4, kind: output, shape index: {1}]  }
   0x1   :  { %12 = vsyncpa [#allocation4 + $0x1], 0 }
   0x2   :  { %13 = vsyncpa [#allocation6], 0 }
   0x3   :  { %15 = vsyncpa [#allocation6 + $0x1], 0  ;;  %s1125_s15 = smov 0   ;;  %s1127_s16 = smov 0  }
   0x4   :  { %s1129_s17 = smov 0   ;;  %s1131_s18 = smov 0  }
   0x5 LB: > { %s1146_s19 = sadd.s32 4294967295, %s1096_s18   ;;  %s827_s20 = sadd.s32 4294967294, %s1096_s18   ;;  %s1096_s18 = sphi %s1131_s18, %s1327_s18   ;;  %s1092_s17 = sphi %s1129_s17, %s1326_s17   ;;  %s1088_s16 = sphi %s1127_s16, %s1325_s16   ;;  %s1084_s15 = sphi %s1125_s15, %s1324_s15  }
   0x6   : > { %s1150_s21 = sadd.s32 1, %s1096_s18   ;;  %s96_s22 = sadd.s32 1, %s1092_s17 }
   0x7   : > { %s93_s23 = ssub.s32 %s1096_s18, %s1150_s21  ;;  %p106_p0 = scmp.ne.s32.totalorder %s1092_s17, %s1088_s16 }
   0x8   : > { %p94_p1 = scmp.eq.s32.totalorder %s93_s23, 0  ;;  %p107_p2 = scmp.eq.s32.totalorder %s1146_s19, 1 }
   0x9   : > { %p112_p3 = scmp.ne.s32.totalorder %s1088_s16, %s1084_s15  ;;  %p113_p4 = scmp.eq.s32.totalorder %s827_s20, 1 }
   0xa   : > { %s1161_s24 = scalar_select %p94_p1, %s1092_s17, %s96_s22  }
   0xb   : > { %p1163_p5 = por %p107_p2, %p106_p0  ;;  %p1167_p6 = por %p113_p4, %p112_p3 }
   0xc   : > { %p830_p7 = scmp.ge.s32.totalorder %s1096_s18, 1  ;;  %p171_p8 = scmp.lt.s32.totalorder %s1096_s18, 3 }
   0xe   : > { %p172_p9 = pnand %p830_p7, %p171_p8 }
   0xf   : > { %p202_p10 = scmp.lt.s32.totalorder (!%p172_p9), %s1146_s19, 1  ;;  %s1249_s22 = sand.u32 (!%p172_p9), 1, %s1088_s16  }
  0x10   : > { %175 = sbr.rel (%p172_p9) target bundleno = 266 (0x10a), region = 32  ;;  %s831_s23 = sshll.u32 (!%p172_p9), %s1249_s22, 5 }
  0x11   : > { %s1254_s27 = scalar_lea.vmem (!%p172_p9), [#allocation3], %s831_s23  ;;  %s927_s28 = sshll.u32 (!%p172_p9), %s1146_s19, 5 }
  0x12   : > { %s714_s5 = scalar_lea.hbm (!%p172_p9), %s1320_s3, %s927_s28  ;;  %s715_s6 = sshll.u32 (!%p172_p9), %s1254_s27, 4  ;;  %s716_s6 = int_to_ptr.vmem [resolvable:$true] %s715_s6 }
  0x13   : > { %s717_s7 = sshll.u32 (!%p172_p9), %s714_s5, 4  ;;  %s698_s8 = scalar_lea.sflag (!%p172_p9), [#allocation4], %s1249_s22  ;;  %s718_s7 = int_to_ptr.hbm [resolvable:$true] %s717_s7 }
  0x15   : > { %v919_v0 = vld [vmem:[%s1318_s1] sm:$0xff]  ;;  %v926_v1 = vld [vmem:[%s1318_s1 + $0x18] sm:$0xff]  ;;  %v920_v2 = vld [vmem:[%s1318_s1 + $0x8] sm:$0xff]  ;;  %s203_s9 = scalar_select %p202_p10, %s1146_s19, 1  ;;  %vm294_vm0 = vcmask 130048   ;;  %vm541_vm1 = vcmask 1046528  }
  0x16   : > { %v925_v3 = vld [vmem:[%s1318_s1 + $0x10] sm:$0xff]  ;;  %368 = vmatpush.bf16.msra.mxu1 %v919_v0  ;;  %579 = vmatpush.bf16.msra.mxu3 %v926_v1  ;;  %vm248_vm2 = vsmask.f32 7424 }
  0x17   : > { %317 = vmatpush.bf16.msra.mxu0 %v920_v2  ;;  %499 = vmatpush.bf16.msra.mxu2 %v925_v3  ;;  %s951_s10 = smul.u32 44, %s203_s9  ;;  %s1016_s9 = sshra.s32 %s718_s7, 4  ;;  %s1017_s9 = int_to_ptr.hbm [resolvable:$true] %s1016_s9 }
  0x18   : > { %p1023_p0 = scmp.lt.s32.totalorder %s1017_s9, %s1320_s3 }
  0x19   : > { %s1190_s13 = scalar_lea.vmem %s1317_s0, %s951_s10  ;;  %s1018_s10 = scalar_lea.hbm %s1017_s9, 32 }
  0x1a   : > { %v915_v4 = vld [vmem:[%s1190_s13] sm:$0xff]  ;;  %v999_v6 = vld [vmem:[%s1190_s13 + $0x4] sm:$0xf0]  ;;  %v921_v7 = vld [vmem:[%s1190_s13 + $0xc] sm:$0xff]  ;;  %p1019_p11 = scmp.ne.s32.totalorder %s1017_s9, %s1018_s10 }
  0x1b   : > { %v395_v5 = vld [vmem:[%s1190_s13 + $0x4] sm:$0xff]   ;;  %v252_v10 = vshll.u32 %v915_v4, 16  ;;  %865 = vmatmul.msk.bf16.vlgmr.msra.gmra.mxu1 %vm294_vm0, %v915_v4  ;;  %v250_v11 = vshrl.u32 %v915_v4, 16  ;;  %v440_v13 = vshll.u32 %v921_v7, 16  ;;  %v543_v15 = vrot.slane %v921_v7, 1  ;;  %v917_v27 = vld [vmem:[%s1190_s13 + $0x10] sm:$0xff] }
  0x1c   : > { %v1000_v8 = vld [vmem:[%s1190_s13 + $0x4] sm:$0xe]  ;;  %v916_v9 = vld [vmem:[%s1190_s13 + $0x8] sm:$0xff]  ;;  %v433_v18 = vshrl.u32 %v395_v5, 16  ;;  %v435_v19 = vshll.u32 %v395_v5, 16  ;;  %v922_v29 = vld [vmem:[%s1190_s13 + $0x14] sm:$0xff]  ;;  %p1020_p12 = pnand %p1019_p11, %p1163_p5 }
  0x1d   : > { %v257_v12 = vshll.u32 %v916_v9, 16  ;;  %v1001_v14 = vor.u32 %v1000_v8, %v999_v6  ;;  %v254_v16 = vrot.slane %v252_v10, 1  ;;  %v442_v23 = vrot.slane %v440_v13, 1  ;;  %v918_v42 = vld [vmem:[%s1190_s13 + $0x18] sm:$0xff]  ;;  %v216_v51 = vld [vmem:[%s1190_s13 + $0x20] sm:$0xf] }
  0x1e   : > { %v437_v22 = vrot.slane %v435_v19, 1  ;;  %v261_v30 = vshrl.u32 %v916_v9, 16  ;;  %v265_v31 = vshll.u32 %v917_v27, 16  ;;  %v444_v32 = vshrl.u32 %v921_v7, 16  ;;  %v923_v43 = vld [vmem:[%s1190_s13 + $0x1c] sm:$0xff]  ;;  %p1021_p13 = pneg %p1020_p12 }
  0x1f   : > { %v259_v17 = vrot.slane %v257_v12, 1  ;;  %v542_v20 = vrot.slane %v1001_v14, 1  ;;  %v255_v21 = vor.u32 %v254_v16, %v250_v11  ;;  %v448_v33 = vshll.u32 %v922_v29, 16  ;;  %v219_v52 = vld [vmem:[%s1190_s13 + $0x24] sm:$0x1] }
  0x20   : > { %v438_v26 = vor.u32 %v437_v22, %v433_v18  ;;  %v545_v34 = vrot.slane %v922_v29, 1  ;;  %v267_v36 = vrot.slane %v265_v31, 1  ;;  %v446_v37 = vor.u32 %v444_v32, %v442_v23  ;;  %v886_v61 = vld [vmem:[%s1190_s13 + $0x24] sm:$0xf]  ;;  %v924_v62 = vld [vmem:[%s1190_s13 + $0x24] sm:$0x10] }
  0x21   : > { %v544_v24 = vsel %vm541_vm1, %v542_v20, %v543_v15  ;;  %v260_v25 = vsel %vm248_vm2, %v255_v21, %v259_v17  ;;  %v263_v35 = vor.u32 %v261_v30, %v259_v17  ;;  %v450_v38 = vrot.slane %v448_v33, 1  ;;  %s1022_s13 = scalar_lea.hbm %s1320_s3, 64 }
  0x22   : > { %903 = vmatmul.msk.bf16.vlgmr.msra.gmra.mxu3 %vm294_vm0, %v544_v24  ;;  %856 = vmatmul.msk.bf16.vlgmr.msra.gmra.mxu0 %vm294_vm0, %v260_v25  ;;  %v443_v28 = vsel %vm248_vm2, %v438_v26, %v442_v23  ;;  %v546_v39 = vsel %vm541_vm1, %v543_v15, %v545_v34  ;;  %v269_v44 = vshrl.u32 %v917_v27, 16  ;;  %v273_v45 = vshll.u32 %v918_v42, 16  ;;  %v1241_v26 = vld [vmem:[%s1319_s2] ss:$0 sm:$0xff]  ;;  %p1024_p1 = scmp.lt.s32.totalorder %s1022_s13, %s1018_s10 }
  0x23   : > { %892 = vmatmul.msk.bf16.vlgmr.msra.gmra.mxu2 %vm294_vm0, %v443_v28  ;;  %v268_v40 = vsel %vm248_vm2, %v263_v35, %v267_v36  ;;  %v451_v41 = vsel %vm248_vm2, %v446_v37, %v450_v38  ;;  %v452_v46 = vshrl.u32 %v922_v29, 16  ;;  %v456_v47 = vshll.u32 %v923_v43, 16 }
  0x24   : > { %v547_v48 = vrot.slane %v923_v43, 1  ;;  %v271_v49 = vor.u32 %v269_v44, %v267_v36  ;;  %v275_v50 = vrot.slane %v273_v45, 1  ;;  %v241_v57 = vunpack.c.l.b16 %v216_v51  ;;  %p1025_p2 = por %p1024_p1, %p1023_p0 }
  0x25   : > { %v454_v53 = vor.u32 %v452_v46, %v450_v38  ;;  %v458_v54 = vrot.slane %v456_v47, 1  ;;  %v242_v58 = vunpack.c.l.b16 %v219_v52  ;;  %v887_v63 = vor.u32 %v924_v62, %v886_v61 }
  0x26   : > { %v548_v55 = vsel %vm541_vm1, %v545_v34, %v547_v48  ;;  %v276_v56 = vsel %vm248_vm2, %v271_v49, %v275_v50  ;;  %v277_v0 = vshrl.u32 %v918_v42, 16  ;;  %v460_v2 = vshrl.u32 %v923_v43, 16  ;;  %p1026_p3 = pnand %p1025_p2, %p1021_p13 }
  0x27   : > { %v459_v59 = vsel %vm248_vm2, %v454_v53, %v458_v54  ;;  %v247_v60 = vpack.c.b16 %v242_v58, %v241_v57  ;;  %v464_v3 = vshll.u32 %v887_v63, 16  ;;  %v549_v4 = vrot.slane %v887_v63, 1 }
  0x28   : > { %v279_v5 = vor.u32 %v277_v0, %v275_v50  ;;  %v462_v7 = vor.u32 %v460_v2, %v458_v54  ;;  %v343_v12 = vpack.c.b16 %v241_v57, %v241_v57  ;;  %v468_v14 = vshrl.u32 %v887_v63, 16 }
  0x29   : > { %v281_v1 = vshll.u32 %v247_v60, 16  ;;  %v466_v8 = vrot.slane %v464_v3, 1  ;;  %v285_v13 = vshrl.u32 %v247_v60, 16 }
  0x2b   : > { %866 = vmatmul.msk.bf16.gmra.mxu1 %vm294_vm0, %v916_v9  ;;  %v283_v6 = vrot.slane %v281_v1, 1  ;;  %v550_v9 = vsel %vm541_vm1, %v547_v48, %v549_v4  ;;  %v467_v11 = vsel %vm248_vm2, %v462_v7, %v466_v8  ;;  %v470_v16 = vor.u32 %v468_v14, %v466_v8 }
  0x2d   : > { %v284_v10 = vsel %vm248_vm2, %v279_v5, %v283_v6  ;;  %v287_v15 = vor.u32 %v285_v13, %v283_v6 }
  0x32   : > { %904 = vmatmul.msk.bf16.gmra.mxu3 %vm294_vm0, %v546_v39  ;;  %857 = vmatmul.msk.bf16.gmra.mxu0 %vm294_vm0, %v268_v40 }
  0x33   : > { %893 = vmatmul.msk.bf16.gmra.mxu2 %vm294_vm0, %v451_v41 }
  0x3b   : > { %867 = vmatmul.msk.bf16.gmra.mxu1 %vm294_vm0, %v917_v27 }
  0x42   : > { %905 = vmatmul.msk.bf16.gmra.mxu3 %vm294_vm0, %v548_v55  ;;  %858 = vmatmul.msk.bf16.gmra.mxu0 %vm294_vm0, %v276_v56 }
  0x43   : > { %894 = vmatmul.msk.bf16.gmra.mxu2 %vm294_vm0, %v459_v59 }
  0x4b   : > { %868 = vmatmul.msk.bf16.gmra.mxu1 %vm294_vm0, %v918_v42 }
  0x52   : > { %906 = vmatmul.msk.bf16.gmra.mxu3 %vm294_vm0, %v550_v9  ;;  %859 = vmatmul.msk.bf16.gmra.mxu0 %vm294_vm0, %v284_v10 }
  0x53   : > { %895 = vmatmul.msk.bf16.gmra.mxu2 %vm294_vm0, %v467_v11 }
  0x5b   : > { %869 = vmatmul.msk.bf16.gmra.mxu1 %vm294_vm0, %v343_v12 }
  0x62   : > { %907 = vmatmul.msk.bf16.gmra.mxu3 %vm294_vm0, %v549_v4  ;;  %860 = vmatmul.msk.bf16.gmra.mxu0 %vm294_vm0, %v287_v15 }
  0x63   : > { %896 = vmatmul.msk.bf16.gmra.mxu2 %vm294_vm0, %v470_v16 }
  0x98   : > { %v370_v17 = vpop.f32.mrf.mxu1 }
  0x9f   : > { %v319_v18 = vpop.f32.mrf.mxu0 }
  0xa0   : > { %v372_v19 = vpop.f32.mrf.mxu1  ;;  %v371_v20 = vadd.f32 %v370_v17, %v319_v18 }
  0xa5   : > { %v581_v21 = vpop.f32.mrf.mxu3 }
  0xa6   : > { %v501_v23 = vpop.f32.mrf.mxu2 }
  0xa7   : > { %v321_v22 = vpop.f32.mrf.mxu0  ;;  %v525_v25 = vadd.f32 %v501_v23, %v371_v20 }
  0xa8   : > { %v375_v24 = vpop.f32.mrf.mxu1  ;;  %v373_v30 = vadd.f32 %v372_v19, %v321_v22 }
  0xa9   : > { %v605_v27 = vadd.f32 %v581_v21, %v525_v25 }
  0xab   : > { %v1244_v28 = vadd.f32 %v1241_v26, %v605_v27 }
  0xad   : > { %v583_v29 = vpop.f32.mrf.mxu3 }
  0xae   : > { %v503_v32 = vpop.f32.mrf.mxu2 }
  0xaf   : > { %v324_v31 = vpop.f32.mrf.mxu0  ;;  %v526_v34 = vadd.f32 %v503_v32, %v373_v30 }
  0xb0   : > { %v377_v33 = vpop.f32.mrf.mxu1  ;;  %v376_v36 = vadd.f32 %v375_v24, %v324_v31 }
  0xb1   : > { %v606_v35 = vadd.f32 %v583_v29, %v526_v34 }
  0xb3   : > { %v619_v37 = vadd.f32 %v1241_v26, %v606_v35 }
  0xb5   : > { %v586_v38 = vpop.f32.mrf.mxu3  ;;  %628 = vst [vmem:[#allocation2 + $0x8] sm:$0xff] %v619_v37 }
  0xb6   : > { %v506_v40 = vpop.f32.mrf.mxu2 }
  0xb7   : > { %v326_v39 = vpop.f32.mrf.mxu0  ;;  %v527_v42 = vadd.f32 %v506_v40, %v376_v36 }
  0xb8   : > { %v380_v41 = vpop.f32.mrf.mxu1  ;;  %v378_v46 = vadd.f32 %v377_v33, %v326_v39  ;;  %v657_v39 = vmul.f32 %v1244_v28, %v1244_v28 }
  0xb9   : > { %v607_v43 = vadd.f32 %v586_v38, %v527_v42 }
  0xbb   : > { %v620_v44 = vadd.f32 %v1241_v26, %v607_v43 }
  0xbd   : > { %v588_v45 = vpop.f32.mrf.mxu3  ;;  %629 = vst [vmem:[#allocation2 + $0x10] sm:$0xff] %v620_v44 }
  0xbe   : > { %v508_v48 = vpop.f32.mrf.mxu2 }
  0xbf   : > { %v329_v47 = vpop.f32.mrf.mxu0  ;;  %v528_v50 = vadd.f32 %v508_v48, %v378_v46 }
  0xc0   : > { %v382_v49 = vpop.f32.mrf.mxu1  ;;  %v381_v52 = vadd.f32 %v380_v41, %v329_v47 }
  0xc1   : > { %v608_v51 = vadd.f32 %v588_v45, %v528_v50 }
  0xc3   : > { %v621_v53 = vadd.f32 %v1241_v26, %v608_v51 }
  0xc4   : > { %v637_v55 = vld [vmem:[#allocation2 + $0x9] sm:$0xff] }
  0xc5   : > { %v591_v54 = vpop.f32.mrf.mxu3  ;;  %630 = vst [vmem:[#allocation2 + $0x18] sm:$0xff] %v621_v53  ;;  %v931_v57 = vpack.c.bf16 %v637_v55, %v1244_v28  ;;  %v658_v36 = vmul.f32 %v637_v55, %v637_v55  ;;  %v644_v38 = vadd.f32 %v637_v55, %v1244_v28 }
  0xc6   : > { %v511_v58 = vpop.f32.mrf.mxu2 }
  0xc7   : > { %v331_v56 = vpop.f32.mrf.mxu0  ;;  %v529_v60 = vadd.f32 %v511_v58, %v381_v52  ;;  %932 = vst [vmem:[%s1254_s27] sm:$0xff] %v931_v57   ;;  %v665_v45 = vadd.f32 %v658_v36, %v657_v39 }
  0xc8   : > { %v385_v59 = vpop.f32.mrf.mxu1  ;;  %v383_v0 = vadd.f32 %v382_v49, %v331_v56 }
  0xc9   : > { %v609_v61 = vadd.f32 %v591_v54, %v529_v60 }
  0xcb   : > { %v622_v62 = vadd.f32 %v1241_v26, %v609_v61 }
  0xcc   : > { %v638_v9 = vld [vmem:[#allocation2 + $0x12] sm:$0xff] }
  0xcd   : > { %v593_v63 = vpop.f32.mrf.mxu3  ;;  %631 = vst [vmem:[#allocation2 + $0x20] sm:$0xff] %v622_v62  ;;  %v659_v40 = vmul.f32 %v638_v9, %v638_v9  ;;  %v645_v43 = vadd.f32 %v644_v38, %v638_v9 }
  0xce   : > { %v513_v2 = vpop.f32.mrf.mxu2 }
  0xcf   : > { %v334_v1 = vpop.f32.mrf.mxu0  ;;  %v530_v4 = vadd.f32 %v513_v2, %v383_v0  ;;  %v666_v48 = vadd.f32 %v665_v45, %v659_v40 }
  0xd0   : > { %v387_v3 = vpop.f32.mrf.mxu1  ;;  %v386_v6 = vadd.f32 %v385_v59, %v334_v1 }
  0xd1   : > { %v610_v5 = vadd.f32 %v593_v63, %v530_v4 }
  0xd3   : > { %v623_v7 = vadd.f32 %v1241_v26, %v610_v5 }
  0xd4   : > { %v639_v10 = vld [vmem:[#allocation2 + $0x1b] sm:$0xff] }
  0xd5   : > { %v596_v8 = vpop.f32.mrf.mxu3  ;;  %632 = vst [vmem:[#allocation2 + $0x28] sm:$0xff] %v623_v7  ;;  %v936_v12 = vpack.c.bf16 %v639_v10, %v638_v9  ;;  %v660_v44 = vmul.f32 %v639_v10, %v639_v10  ;;  %v646_v46 = vadd.f32 %v645_v43, %v639_v10 }
  0xd6   : > { %v516_v13 = vpop.f32.mrf.mxu2 }
  0xd7   : > { %v336_v11 = vpop.f32.mrf.mxu0  ;;  %v531_v15 = vadd.f32 %v516_v13, %v386_v6  ;;  %948 = vst [vmem:[%s1254_s27 + $0x8] sm:$0xff] %v936_v12  }
  0xd8   : > { %v390_v14 = vpop.f32.mrf.mxu1  ;;  %v388_v19 = vadd.f32 %v387_v3, %v336_v11 }
  0xd9   : > { %v611_v16 = vadd.f32 %v596_v8, %v531_v15 }
  0xdb   : > { %v624_v17 = vadd.f32 %v1241_v26, %v611_v16 }
  0xdc   : > { %v640_v30 = vld [vmem:[#allocation2 + $0x24] sm:$0xff] }
  0xdd   : > { %v598_v18 = vpop.f32.mrf.mxu3  ;;  %633 = vst [vmem:[#allocation2 + $0x30] sm:$0xff] %v624_v17  ;;  %v661_v47 = vmul.f32 %v640_v30, %v640_v30  ;;  %v647_v28 = vadd.f32 %v646_v46, %v640_v30 }
  0xde   : > { %v518_v21 = vpop.f32.mrf.mxu2 }
  0xdf   : > { %v339_v20 = vpop.f32.mrf.mxu0  ;;  %v532_v23 = vadd.f32 %v518_v21, %v388_v19 }
  0xe0   : > { %v392_v22 = vpop.f32.mrf.mxu1  ;;  %v391_v25 = vadd.f32 %v390_v14, %v339_v20 }
  0xe1   : > { %v612_v24 = vadd.f32 %v598_v18, %v532_v23 }
  0xe3   : > { %v625_v27 = vadd.f32 %v1241_v26, %v612_v24 }
  0xe4   : > { %v641_v31 = vld [vmem:[#allocation2 + $0x2d] sm:$0xff] }
  0xe5   : > { %v601_v29 = vpop.f32.mrf.mxu3  ;;  %634 = vst [vmem:[#allocation2 + $0x38] sm:$0xff] %v625_v27  ;;  %v941_v33 = vpack.c.bf16 %v641_v31, %v640_v30  ;;  %v662_v51 = vmul.f32 %v641_v31, %v641_v31  ;;  %v648_v52 = vadd.f32 %v647_v28, %v641_v31 }
  0xe6   : > { %v521_v34 = vpop.f32.mrf.mxu2 }
  0xe7   : > { %v341_v32 = vpop.f32.mrf.mxu0  ;;  %v533_v35 = vadd.f32 %v521_v34, %v391_v25  ;;  %949 = vst [vmem:[%s1254_s27 + $0x10] sm:$0xff] %v941_v33  }
  0xe9   : > { %v613_v37 = vadd.f32 %v601_v29, %v533_v35 }
  0xeb   : > { %v626_v41 = vadd.f32 %v1241_v26, %v613_v37  ;;  %v667_v26 = vadd.f32 %v666_v48, %v660_v44 }
  0xec   : > { %v642_v50 = vld [vmem:[#allocation2 + $0x36] sm:$0xff] }
  0xed   : > { %v603_v42 = vpop.f32.mrf.mxu3  ;;  %635 = vst [vmem:[#allocation2 + $0x40] sm:$0xff] %v626_v41  ;;  %v663_v53 = vmul.f32 %v642_v50, %v642_v50  ;;  %v668_v54 = vadd.f32 %v667_v26, %v661_v47  ;;  %v649_v55 = vadd.f32 %v648_v52, %v642_v50 }
  0xee   : > { %v523_v49 = vpop.f32.mrf.mxu2 }
  0xef   : > { %v669_v56 = vadd.f32 %v668_v54, %v662_v51 }
  0xf1   : > { %v670_v61 = vadd.f32 %v669_v56, %v663_v53 }
  0xf4   : > { %v643_v57 = vld [vmem:[#allocation2 + $0x3f] sm:$0xff] }
  0xf5   : > { %v946_v58 = vpack.c.bf16 %v643_v57, %v642_v50  ;;  %v650_v59 = vadd.f32 %v649_v55, %v643_v57  ;;  %v664_v60 = vmul.f32 %v643_v57, %v643_v57 }
  0xf7   : > { %950 = vst [vmem:[%s1254_s27 + $0x18] sm:$0xff] %v946_v58   ;;  %v651_v62 = vrot.slane %v650_v59, 4  ;;  %v671_v63 = vadd.f32 %v670_v61, %v664_v60 }
  0xf8   : > { %1029 = shalt.err (!%p1026_p3)
}
  0xf9   : > { %s1098_s23 = smov 64   ;;  %s1099_s27 = smov 4   ;;  %v652_v0 = vadd.f32 %v651_v62, %v650_v59  ;;  %v672_v1 = vrot.slane %v671_v63, 4  ;;  %vm678_vm3 = vcmask 1040384  }
  0xfa   : > { %952 = dma.vmem_to_hbm [thread:$0]  (%p1163_p5), %s716_s6, 512, %s718_s7, %s698_s8, %s1098_s23, %s1098_s23, %s1099_s27  }
  0xfb   : > { %s832_s28 = sshll.u32 %s1249_s22, 1  ;;  %v653_v2 = vrot.slane %v652_v0, 2  ;;  %v673_v3 = vadd.f32 %v672_v1, %v671_v63  ;;  %s912_s29 = sshll.u32 %s1146_s19, 1 }
  0xfc   : > { %s730_s9 = scalar_lea.hbm %s1321_s4, %s912_s29  ;;  %s201_s10 = scalar_lea.vmem [#allocation5], %s832_s28 }
  0xfd   : > { %v654_v4 = vadd.f32 %v653_v2, %v652_v0  ;;  %v674_v5 = vrot.slane %v673_v3, 2  ;;  %s732_s11 = sshll.u32 %s201_s10, 4  ;;  %s734_s6 = sshll.u32 %s730_s9, 4  ;;  %s733_s11 = int_to_ptr.vmem [resolvable:$true] %s732_s11  ;;  %s735_s6 = int_to_ptr.hbm [resolvable:$true] %s734_s6 }
  0xfe   : > { %s703_s19 = scalar_lea.sflag [#allocation6], %s1249_s22  ;;  %s1044_s7 = sshra.s32 %s735_s6, 4  ;;  %s1045_s7 = int_to_ptr.hbm [resolvable:$true] %s1044_s7 }
  0xff   : > { %v655_v6 = vrot.slane %v654_v4, 1  ;;  %v675_v7 = vadd.f32 %v674_v5, %v673_v3  ;;  %s1046_s8 = scalar_lea.hbm %s1045_s7, 2  ;;  %s1050_s14 = scalar_lea.hbm %s1321_s4, 4 }
 0x100   : > { %p1047_p4 = scmp.ne.s32.totalorder %s1045_s7, %s1046_s8  ;;  %p1051_p9 = scmp.lt.s32.totalorder %s1045_s7, %s1321_s4 }
 0x101   : > { %v676_v8 = vrot.slane %v675_v7, 1  ;;  %v656_v9 = vadd.f32 %v655_v6, %v654_v4  ;;  %p1052_p10 = scmp.lt.s32.totalorder %s1050_s14, %s1046_s8 }
 0x102   : > { %p1048_p7 = pnand %p1047_p4, %p1163_p5 }
 0x103   : > { %v677_v10 = vadd.f32 %v676_v8, %v675_v7  ;;  %p1053_p11 = por %p1052_p10, %p1051_p9 }
 0x104   : > { %p1049_p8 = pneg %p1048_p7 }
 0x105   : > { %v679_v11 = vsel %vm678_vm3, %v656_v9, %v677_v10 }
 0x106   : > { %680 = vst [vmem:[%s201_s10] sm:$0x3] %v679_v11  ;;  %p1054_p12 = pnand %p1053_p11, %p1049_p8 }
 0x108   : > { %1057 = shalt.err (!%p1054_p12)
}
 0x109   : > { %953 = dma.vmem_to_hbm [thread:$0]  (%p1163_p5), %s733_s11, 32, %s735_s6, %s703_s19  }
 0x10a PF: > { %p963_p13 = scmp.ge.s32.totalorder %s1096_s18, 2  ;;  %s746_s22 = sand.u32 1, %s1084_s15  }
 0x10b   : > { %s747_s27 = scalar_lea.sflag [#allocation4], %s746_s22 }
 0x10c   : > { %p957_p0 = pnand %p963_p13, %p1167_p6 }
 0x10e   : > { %p958_p1 = pneg %p957_p0 }
 0x110   : > { %1075 = dma.done.wait (%p958_p1), %s747_s27, 512  }
 0x111   : > { %1077 = vsyncadd (%p958_p1), %s747_s27, 4294966784  ;;  %s757_s28 = scalar_lea.sflag [#allocation6], %s746_s22 }
 0x112   : > { %1079 = dma.done.wait (%p958_p1), %s757_s28, 32  }
 0x113   : > { %1081 = vsyncadd (%p958_p1), %s757_s28, 4294967264  ;;  %p18_p5 = scmp.ge.s32.totalorder %s1150_s21, 4   ;;  %s1324_s15 = smov %s1088_s16 }
 0x114   : > { %s1325_s16 = smov %s1092_s17  ;;  %s1326_s17 = smov %s1161_s24 }
 0x115   : > { %s1327_s18 = smov %s1150_s21  ;;  %20 = sbr.rel (!%p18_p5) target bundleno = 5 (0x5), region = 87 }
 0x11a   :  { %763 = vsyncpa [#allocation4], 1 }
 0x11b   :  { %765 = vsyncpa [#allocation4 + $0x1], 1 }
 0x11c   :  { %766 = vsyncpa [#allocation6], 1 }
 0x11d   :  { %768 = vsyncpa [#allocation6 + $0x1], 1 }

</bundles_post_ra>
